<compile_context>
chip_gen: v7x
topology: tpu7x:2x2x1
jax: 0.10.0
libtpu: 0.0.40
codegen_flags: <defaults>
</compile_context>

<pallas_src>
import jax
import jax.numpy as jnp
from jax.experimental import pallas as pl
from jax.experimental.pallas import tpu as pltpu


def attention_kernel(x_ref, w_ref, b_ref, out_ref):
    # x_ref:   (TB, S, D) VMEM  batch tile of sequences
    # w_ref:   (1, D)     VMEM  linear weight, lane-dense layout
    # b_ref:   (1,)       SMEM  linear bias (scalar)
    # out_ref: (TB, D)    VMEM  pooled context vectors (sublane/lane dense)
    x = x_ref[...].astype(jnp.float32)            # single upcast per tile (v5e bf16)
    w = w_ref[...].astype(jnp.float32)            # (1, D)
    TB, S, D = x.shape

    # scores[b, s] = sum_d x[b, s, d] * w[d] + bias
    # VPU multiply + XLU lane-reduce; keeps the MXU free and the weight lane-dense.
    scores = jnp.sum(x * w.reshape(1, 1, D), axis=-1) + b_ref[0]   # (TB, S)

    # Softmax over the sequence axis (PyTorch dim=1).
    m = jnp.max(scores, axis=-1, keepdims=True)                    # (TB, 1)
    e = jnp.exp(scores - m)                                        # (TB, S)
    denom = jnp.sum(e, axis=-1, keepdims=True)                     # (TB, 1)

    # Unnormalized weighted sum over S; normalize once at the end.
    if S >= 256:
        # Long sequences: contract over S on the MXU (K=S, N=D lane-dense output).
        ctx = jax.lax.dot_general(
            e, x,
            dimension_numbers=(((1,), (1,)), ((0,), (0,))),
            preferred_element_type=jnp.float32)                    # (TB, D)
    else:
        # Short sequences (e.g. S=8): elementwise mul + sublane reduce is cheapest.
        ctx = jnp.sum(e[:, :, None] * x, axis=1)                   # (TB, D)

    # approx=True would use the raw EUP estimate; kept exact here so the 1e-5
    # reference tolerance holds (compute is nowhere near the bottleneck anyway).
    inv = pl.reciprocal(denom, approx=False)                       # (TB, 1)
    out_ref[...] = (ctx * inv).astype(out_ref.dtype)


def _round_up(x, m):
    return ((x + m - 1) // m) * m


def attention_forward(lstm_output, weight, bias, *, tb=None):
    """lstm_output: (B, S, D); weight: (1, D) (PyTorch layout); bias: (1,)."""
    B, S, D = lstm_output.shape
    orig_B = B

    # Pick a batch tile: multiple of 8 (sublane-dense output), sized so a
    # double-buffered input block stays around ~2 MiB (fits v7x's smaller VMEM
    # while still being large enough to approach HBM roofline on v5e/v6e).
    if tb is None:
        bytes_per_row = S * D * 4
        target_block_bytes = 2 * 1024 * 1024
        tb = target_block_bytes // max(bytes_per_row, 1)
        tb = max(8, min(512, (tb // 8) * 8))
    else:
        tb = max(8, (tb // 8) * 8)
    # Don't make the tile larger than the (padded) batch.
    tb = min(tb, _round_up(B, 8))
    # Note: for extremely long sequences (S*D per 8 rows > a few MiB) one would
    # additionally tile S with an online-softmax accumulator; not needed here.

    B_pad = _round_up(B, tb)
    if B_pad != B:
        lstm_output = jnp.pad(lstm_output, ((0, B_pad - B), (0, 0), (0, 0)))

    w = weight.reshape(1, D).astype(lstm_output.dtype)   # lane-dense (1, D)
    b = bias.reshape(1).astype(jnp.float32)              # scalar -> SMEM

    out = pl.pallas_call(
        attention_kernel,
        out_shape=jax.ShapeDtypeStruct((B_pad, D), lstm_output.dtype),
        grid_spec=pltpu.PrefetchScalarGridSpec(
            num_scalar_prefetch=0,
            grid=(B_pad // tb,),
            in_specs=[
                pl.BlockSpec((tb, S, D), lambda i: (i, 0, 0)),        # batch tile
                pl.BlockSpec((1, D), lambda i: (0, 0)),               # shared weight
                pl.BlockSpec(memory_space=pltpu.MemorySpace.SMEM),    # bias scalar
            ],
            out_specs=pl.BlockSpec((tb, D), lambda i: (i, 0)),        # dense slab
        ),
        compiler_params=pltpu.CompilerParams(
            dimension_semantics=("parallel",),        # megacore sharding on v7x
            vmem_limit_bytes=48 * 1024 * 1024,
        ),
    )(lstm_output, w, b)
    return out[:orig_B]


def attention_ref(lstm_output, weight, bias):
    scores = jnp.einsum("bsd,od->bso", lstm_output, weight) + bias  # (B, S, 1)
    weights = jax.nn.softmax(scores, axis=1)
    return jnp.sum(weights * lstm_output, axis=1)


if __name__ == "__main__":
    # Shapes consistent with the module: hidden_size=128 -> feature dim D=256.
    hidden_size = 128
    B, S, D = 2, 8, 2 * hidden_size

    key = jax.random.PRNGKey(0)
    k_x, k_w, k_b, k_x2 = jax.random.split(key, 4)

    lstm_output = jax.random.normal(k_x, (B, S, D), dtype=jnp.float32)

    # Deterministic parameter init, matching nn.Linear's uniform(-1/sqrt(in), 1/sqrt(in)).
    bound = 1.0 / jnp.sqrt(jnp.float32(D))
    weight = jax.random.uniform(k_w, (1, D), jnp.float32, -bound, bound)
    bias = jax.random.uniform(k_b, (1,), jnp.float32, -bound, bound)

    out = attention_forward(lstm_output, weight, bias)
    out = jax.block_until_ready(out)
    ref = attention_ref(lstm_output, weight, bias)
    assert out.shape == (B, D)
    assert jnp.allclose(out, ref, atol=1e-5, rtol=1e-5), "mismatch vs reference"

    # Second check: non-multiple-of-tile batch (exercises padding + multi-step grid).
    B2 = 20
    x2 = jax.random.normal(k_x2, (B2, S, D), dtype=jnp.float32)
    out2 = jax.block_until_ready(attention_forward(x2, weight, bias, tb=8))
    ref2 = attention_ref(x2, weight, bias)
    assert out2.shape == (B2, D)
    assert jnp.allclose(out2, ref2, atol=1e-5, rtol=1e-5), "mismatch vs reference (padded batch)"

    print("KERNEL_OK")
</pallas_src>

<mosaic_0001>
module attributes {stable_mosaic.version = 11 : i64} {
  func.func @attention_kernel(%arg0: i32, %arg1: memref<8x8x256xf32, #tpu.memory_space<vmem>>, %arg2: memref<1x256xf32, #tpu.memory_space<vmem>>, %arg3: memref<1xf32, #tpu.memory_space<smem>>, %arg4: memref<8x256xf32, #tpu.memory_space<vmem>>) attributes {dimension_semantics = [#tpu.dimension_semantics<parallel>], iteration_bounds = array<i64: 1>, scalar_prefetch = 0 : i64, scratch_operands = 0 : i64, tpu.core_type = #tpu.core_type<tc>, window_params = [{transform_indices = @transform_0, window_bounds = array<i64: 8, 8, 256>}, {pipeline_mode = #tpu.pipeline_mode<synchronous>, transform_indices = @transform_1, window_bounds = array<i64: 1, 256>}, {transform_indices = @transform_2, window_bounds = array<i64: 1>}, {transform_indices = @transform_3, window_bounds = array<i64: 8, 256>}]} {
    %c0 = arith.constant 0 : index
    %c0_0 = arith.constant 0 : index
    %c0_1 = arith.constant 0 : index
    %0 = vector.load %arg1[%c0, %c0_0, %c0_1] : memref<8x8x256xf32, #tpu.memory_space<vmem>>, vector<8x8x256xf32>
    %c0_2 = arith.constant 0 : index
    %c0_3 = arith.constant 0 : index
    %1 = vector.load %arg2[%c0_2, %c0_3] : memref<1x256xf32, #tpu.memory_space<vmem>>, vector<1x256xf32>
    %2 = vector.shape_cast %1 : vector<1x256xf32> to vector<1x1x256xf32>
    %3 = vector.broadcast %2 : vector<1x1x256xf32> to vector<8x8x256xf32>
    %4 = arith.mulf %0, %3 : vector<8x8x256xf32>
    %cst = arith.constant dense<0.000000e+00> : vector<8x8xf32>
    %5 = vector.multi_reduction <add>, %4, %cst [2] : vector<8x8x256xf32> to vector<8x8xf32>
    %c0_4 = arith.constant 0 : index
    %6 = memref.load %arg3[%c0_4] : memref<1xf32, #tpu.memory_space<smem>>
    %7 = vector.broadcast %6 : f32 to vector<8x8xf32>
    %8 = arith.addf %5, %7 : vector<8x8xf32>
    %cst_5 = arith.constant dense<0xFF800000> : vector<8xf32>
    %9 = vector.multi_reduction <maximumf>, %8, %cst_5 [1] : vector<8x8xf32> to vector<8xf32>
    %10 = vector.shape_cast %9 : vector<8xf32> to vector<8x1xf32>
    %11 = vector.broadcast %10 : vector<8x1xf32> to vector<8x8xf32>
    %12 = arith.subf %8, %11 : vector<8x8xf32>
    %13 = math.exp %12 : vector<8x8xf32>
    %cst_6 = arith.constant dense<0.000000e+00> : vector<8xf32>
    %14 = vector.multi_reduction <add>, %13, %cst_6 [1] : vector<8x8xf32> to vector<8xf32>
    %15 = vector.shape_cast %14 : vector<8xf32> to vector<8x1xf32>
    %16 = vector.shape_cast %13 : vector<8x8xf32> to vector<8x8x1xf32>
    %17 = vector.broadcast %16 : vector<8x8x1xf32> to vector<8x8x256xf32>
    %18 = arith.mulf %17, %0 : vector<8x8x256xf32>
    %cst_7 = arith.constant dense<0.000000e+00> : vector<8x256xf32>
    %19 = vector.multi_reduction <add>, %18, %cst_7 [1] : vector<8x8x256xf32> to vector<8x256xf32>
    %20 = tpu.reciprocal %15 : vector<8x1xf32> -> vector<8x1xf32>
    %21 = vector.broadcast %20 : vector<8x1xf32> to vector<8x256xf32>
    %22 = arith.mulf %19, %21 : vector<8x256xf32>
    %c0_8 = arith.constant 0 : index
    %c0_9 = arith.constant 0 : index
    %23 = vector.load %arg4[%c0_8, %c0_9] : memref<8x256xf32, #tpu.memory_space<vmem>>, vector<8x256xf32>
    tpu.vector_store %arg4[%c0_8, %c0_9], %22 {strides = array<i32>} : memref<8x256xf32, #tpu.memory_space<vmem>>, vector<8x256xf32>,
    return
  }
  func.func @transform_0(%arg0: i32) -> (i32, i32, i32) {
    %c0_i32 = arith.constant 0 : i32
    %c0_i32_0 = arith.constant 0 : i32
    %c0_i32_1 = arith.constant 0 : i32
    return %arg0, %c0_i32, %c0_i32_0 : i32, i32, i32
  }
  func.func @transform_1(%arg0: i32) -> (i32, i32) {
    %c0_i32 = arith.constant 0 : i32
    %c0_i32_0 = arith.constant 0 : i32
    %c0_i32_1 = arith.constant 0 : i32
    return %c0_i32, %c0_i32_0 : i32, i32
  }
  func.func @transform_2(%arg0: i32) -> i32 {
    %c0_i32 = arith.constant 0 : i32
    %c0_i32_0 = arith.constant 0 : i32
    return %c0_i32 : i32
  }
  func.func @transform_3(%arg0: i32) -> (i32, i32) {
    %c0_i32 = arith.constant 0 : i32
    %c0_i32_0 = arith.constant 0 : i32
    return %arg0, %c0_i32 : i32, i32
  }
}

</mosaic_0001>

<bundles_post_ra>
// kernel: tpu_custom_call.1
= control target key start
LH: loop header
LB: loop body
LE: loop exit
PB: predicated region body
PF: predicated region fallthrough
CT: control target
= control target key end

     0   :  { %9 = vsyncpa [#allocation4], 0  ;;  %s784_s0 = inlined_call_operand.hbm [shape: f32[8,8,256], index: 0, kind: input, shape index: {}]   ;;  %s785_s1 = inlined_call_operand.vmem [shape: f32[1,256], index: 1, kind: input, shape index: {}]   ;;  %s786_s2 = inlined_call_operand.<no memory space> [shape: f32[1], index: 2, kind: input, shape index: {}]   ;;  %s787_s3 = inlined_call_operand.hbm [shape: f32[8,256], index: 3, kind: output, shape index: {}]  }
   0x1   :  { %10 = vsyncpa [#allocation5], 0  ;;  %s598_s12 = smov [#allocation3]   ;;  %s550_s16 = scalar_lea.hbm %s784_s0, 2048 }
   0x2   :  { %s16_s13 = sshll.u32 %s598_s12, 4  ;;  %p551_p0 = scmp.ne.s32.totalorder %s784_s0, %s550_s16  ;;  %s17_s13 = int_to_ptr.vmem [resolvable:$true] %s16_s13 }
   0x3   :  { %p554_p1 = scmp.lt.u32.totalorder %s550_s16, %s784_s0 }
   0x5   :  { %p556_p2 = pnand %p554_p1, %p551_p0 }
   0x7   :  { %559 = shalt.err (!%p556_p2)
}
   0x8   :  { %s560_s21 = scalar_lea.vmem %s17_s13, 2048  ;;  %p565_p4 = scmp.lt.s32.totalorder %s17_s13, %s17_s13 }
   0x9   :  { %p561_p3 = scmp.ne.s32.totalorder %s17_s13, %s560_s21  ;;  %p566_p5 = scmp.lt.s32.totalorder %s560_s21, %s560_s21 }
   0xb   :  { %p567_p6 = por %p566_p5, %p565_p4 }
   0xd   :  { %p568_p7 = pnand %p567_p6, %p561_p3 }
   0xf   :  { %571 = shalt.err (!%p568_p7)
}
  0x10   :  { %s599_s22 = smov 256   ;;  %s600_s23 = smov 16  }
  0x11   :  { %22 = dma.hbm_to_vmem [thread:$0]  %s784_s0, 2048, %s17_s13, [#allocation4], %s599_s22, %s599_s22, %s600_s23  }
  0x12   :  { %594 = dma.done.wait [#allocation4], 2048  }
  0x13   :  { %595 = vsyncadd [#allocation4], 4294965248  ;;  %v48_v0 = vlaneseq  ;;  %v642_v6 = vld [vmem:[#allocation3] sm:$0xff]  ;;  %v644_v7 = vld [vmem:[#allocation3 + $0x8] sm:$0xff]  ;;  %v99_v49 = vstv %s786_s2  ;;  %vm150_vm0 = vcmask 1041409   ;;  %vm152_vm1 = vcmask 1042434  }
  0x14   :  { %v46_v8 = vld [vmem:[%s785_s1] sm:$0x3]  ;;  %v655_v12 = vld [vmem:[#allocation3 + $0x28] sm:$0xff]  ;;  %v657_v13 = vld [vmem:[#allocation3 + $0x10] sm:$0xff]  ;;  %vm154_vm2 = vcmask 1043459   ;;  %vm156_vm3 = vcmask 1044484  }
  0x15   :  { %v635_v1 = vshrl.u32 %v48_v0, 7  ;;  %v117_v2 = vand.u32 127, %v48_v0  ;;  %v653_v11 = vld [vmem:[#allocation3 + $0x20] sm:$0xff]  ;;  %v659_v14 = vld [vmem:[#allocation3 + $0x18] sm:$0xff]  ;;  %v661_v15 = vld [vmem:[#allocation3 + $0x30] sm:$0xff]  ;;  %vm158_vm4 = vcmask 1045509  }
  0x16   :  { %v663_v16 = vld [vmem:[#allocation3 + $0x38] sm:$0xff]  ;;  %v669_v21 = vld [vmem:[#allocation3 + $0x40] sm:$0xff]  ;;  %v671_v22 = vld [vmem:[#allocation3 + $0x48] sm:$0xff]  ;;  %vm160_vm5 = vcmask 1046534   ;;  %vm162_vm6 = vcmask 1047559   ;;  %vm165_vm7 = vcmask 64512  }
  0x17   :  { %v50_v3 = vsub.s32 0, %v635_v1  ;;  %v54_v4 = vsub.s32 1, %v635_v1  ;;  %v640_v5 = vsub.s32 %v117_v2, %v635_v1  ;;  %v677_v27 = vld [vmem:[#allocation3 + $0x50] sm:$0xff]  ;;  %v679_v28 = vld [vmem:[#allocation3 + $0x58] sm:$0xff]  ;;  %v685_v37 = vld [vmem:[#allocation3 + $0x60] sm:$0xff]  ;;  %s602_s2 = smov [#allocation6]  }
  0x18   :  { %v687_v38 = vld [vmem:[#allocation3 + $0x68] sm:$0xff]  ;;  %v689_v39 = vld [vmem:[#allocation3 + $0x70] sm:$0xff]  ;;  %v691_v40 = vld [vmem:[#allocation3 + $0x78] sm:$0xff]  ;;  %s516_s28 = sshll.u32 %s602_s2, 4  ;;  %s517_s28 = int_to_ptr.vmem [resolvable:$true] %s516_s28 }
  0x19   :  { %v51_v9 = vrot.slane %v46_v8, %v50_v3  ;;  %v55_v10 = vrot.slane %v46_v8, %v54_v4  ;;  %s572_s29 = scalar_lea.vmem %s517_s28, 256  ;;  %p577_p9 = scmp.lt.s32.totalorder %s517_s28, %s517_s28 }
  0x1a   :  { %p573_p8 = scmp.ne.s32.totalorder %s517_s28, %s572_s29  ;;  %p578_p10 = scmp.lt.s32.totalorder %s572_s29, %s572_s29 }
  0x1b   :  { %v58_v17 = vmul.f32 %v51_v9, %v642_v6  ;;  %v59_v18 = vmul.f32 %v55_v10, %v644_v7  ;;  %v62_v19 = vmul.f32 %v51_v9, %v653_v11  ;;  %v63_v20 = vmul.f32 %v55_v10, %v655_v12 }
  0x1c   :  { %v60_v23 = vmul.f32 %v51_v9, %v657_v13  ;;  %v61_v24 = vmul.f32 %v55_v10, %v659_v14  ;;  %v64_v25 = vmul.f32 %v51_v9, %v661_v15  ;;  %v65_v26 = vmul.f32 %v55_v10, %v663_v16  ;;  %p579_p11 = por %p578_p10, %p577_p9 }
  0x1d   :  { %v74_v29 = vadd.f32 %v59_v18, %v58_v17  ;;  %v80_v30 = vadd.f32 %v63_v20, %v62_v19  ;;  %v66_v32 = vmul.f32 %v51_v9, %v669_v21  ;;  %v67_v33 = vmul.f32 %v55_v10, %v671_v22 }
  0x1e   :  { %v77_v31 = vadd.f32 %v61_v24, %v60_v23  ;;  %v83_v34 = vadd.f32 %v65_v26, %v64_v25  ;;  %v68_v35 = vmul.f32 %v51_v9, %v677_v27  ;;  %v69_v36 = vmul.f32 %v55_v10, %v679_v28  ;;  %p580_p12 = pnand %p579_p11, %p573_p8 }
  0x1f   :  { %75 = vadd.xlane.f32.xlu0 %v74_v29  ;;  %81 = vadd.xlane.f32.xlu1 %v80_v30  ;;  %v86_v41 = vadd.f32 %v67_v33, %v66_v32  ;;  %v70_v42 = vmul.f32 %v51_v9, %v685_v37  ;;  %v71_v43 = vmul.f32 %v55_v10, %v687_v38 }
  0x20   :  { %v89_v44 = vadd.f32 %v69_v36, %v68_v35  ;;  %v72_v45 = vmul.f32 %v51_v9, %v689_v39  ;;  %v73_v46 = vmul.f32 %v55_v10, %v691_v40  ;;  %v180_v35 = vsub.s32 2, %v635_v1 }
  0x21   :  { %v92_v47 = vadd.f32 %v71_v43, %v70_v42  ;;  %v184_v36 = vsub.s32 3, %v635_v1 }
  0x22   :  { %v95_v48 = vadd.f32 %v73_v46, %v72_v45  ;;  %v188_v45 = vsub.s32 4, %v635_v1 }
  0x23   :  { %78 = vadd.xlane.f32.xlu0 %v77_v31  ;;  %84 = vadd.xlane.f32.xlu1 %v83_v34  ;;  %v601_v34 = vmov 0  }
  0x24   :  { %531 = vset.pattern.permute.xlu0 %v601_v34  ;;  %530 = vset.pattern.permute.xlu1 %v601_v34 }
  0x27   :  { %87 = vadd.xlane.f32.xlu0 %v86_v41  ;;  %90 = vadd.xlane.f32.xlu1 %v89_v44 }
  0x2b   :  { %93 = vadd.xlane.f32.xlu0 %v92_v47  ;;  %96 = vadd.xlane.f32.xlu1 %v95_v48 }
  0xac   :  { %v76_v50 = vpop.xlane.xlu0 %75  ;;  %v82_v51 = vpop.xlane.xlu1 %81 }
  0xad   :  { %v100_v52 = vadd.f32 %v99_v49, %v76_v50  ;;  %v102_v53 = vadd.f32 %v99_v49, %v82_v51 }
  0xaf   :  { %v121_v58 = vrot.slane %v100_v52, %v640_v5  ;;  %v129_v61 = vrot.slane %v102_v53, %v640_v5 }
  0xb0   :  { %v79_v54 = vpop.xlane.xlu0 %78  ;;  %v85_v55 = vpop.xlane.xlu1 %84 }
  0xb1   :  { %v101_v56 = vadd.f32 %v99_v49, %v79_v54  ;;  %v103_v57 = vadd.f32 %v99_v49, %v85_v55  ;;  %v192_v54 = vsub.s32 5, %v635_v1 }
  0xb3   :  { %v125_v59 = vrot.slane %v101_v56, %v640_v5  ;;  %v133_v60 = vrot.slane %v103_v57, %v640_v5 }
  0xb4   :  { %v88_v62 = vpop.xlane.xlu0 %87  ;;  %v91_v63 = vpop.xlane.xlu1 %90 }
  0xb5   :  { %v151_v0 = vsel %vm150_vm0, %v125_v59, %v121_v58  ;;  %v104_v2 = vadd.f32 %v99_v49, %v88_v62  ;;  %v105_v8 = vadd.f32 %v99_v49, %v91_v63  ;;  %v200_v62 = vsub.s32 7, %v635_v1 }
  0xb6   :  { %v153_v9 = vsel %vm152_vm1, %v129_v61, %v151_v0 }
  0xb7   :  { %v155_v10 = vsel %vm154_vm2, %v133_v60, %v153_v9  ;;  %v137_v17 = vrot.slane %v104_v2, %v640_v5  ;;  %v141_v18 = vrot.slane %v105_v8, %v640_v5 }
  0xb8   :  { %v94_v19 = vpop.xlane.xlu0 %93  ;;  %v97_v20 = vpop.xlane.xlu1 %96 }
  0xb9   :  { %v157_v23 = vsel %vm156_vm3, %v137_v17, %v155_v10  ;;  %v106_v24 = vadd.f32 %v99_v49, %v94_v19  ;;  %v107_v25 = vadd.f32 %v99_v49, %v97_v20 }
  0xba   :  { %v159_v30 = vsel %vm158_vm4, %v141_v18, %v157_v23 }
  0xbb   :  { %v145_v26 = vrot.slane %v106_v24, %v640_v5  ;;  %v149_v29 = vrot.slane %v107_v25, %v640_v5 }
  0xbd   :  { %v161_v31 = vsel %vm160_vm5, %v145_v26, %v159_v30 }
  0xbe   :  { %v163_v32 = vsel %vm162_vm6, %v149_v29, %v161_v31 }
  0xbf   :  { %v166_v33 = vsel %vm165_vm7, %v163_v32, -inf }
  0xc0   :  { %167 = vmax.xlane.f32.xlu0 %v166_v33 }
 0x14d   :  { %v168_v41 = vpop.xlane.xlu0 %167 }
 0x14e   :  { %v173_v42 = vrot.slane %v168_v41, %v50_v3  ;;  %v177_v43 = vrot.slane %v168_v41, %v54_v4  ;;  %v181_v44 = vrot.slane %v168_v41, %v180_v35  ;;  %v185_v46 = vrot.slane %v168_v41, %v184_v36 }
 0x14f   :  { %v189_v55 = vrot.slane %v168_v41, %v188_v45  ;;  %v196_v3 = vsub.s32 6, %v635_v1  ;;  %v193_v60 = vrot.slane %v168_v41, %v192_v54  ;;  %v201_v9 = vrot.slane %v168_v41, %v200_v62 }
 0x150   :  { %v210_v47 = vsub.f32 %v100_v52, %v173_v42  ;;  %v211_v48 = vsub.f32 %v101_v56, %v177_v43  ;;  %v212_v49 = vsub.f32 %v102_v53, %v181_v44  ;;  %v213_v58 = vsub.f32 %v103_v57, %v185_v46 }
 0x151   :  { %v214_v4 = vsub.f32 %v104_v2, %v189_v55  ;;  %v197_v52 = vrot.slane %v168_v41, %v196_v3  ;;  %v215_v56 = vsub.f32 %v105_v8, %v193_v60  ;;  %v217_v18 = vsub.f32 %v107_v25, %v201_v9 }
 0x152   :  { %v218_v50 = vmul.f32 1.442695, %v210_v47  ;;  %v220_v51 = vmul.f32 1.442695, %v211_v48  ;;  %v222_v59 = vmul.f32 1.442695, %v212_v49 }
 0x153   :  { %v224_v61 = vmul.f32 1.442695, %v213_v58  ;;  %v226_v53 = vmul.f32 1.442695, %v214_v4  ;;  %v216_v57 = vsub.f32 %v106_v24, %v197_v52  ;;  %v228_v10 = vmul.f32 1.442695, %v215_v56 }
 0x154   :  { %532 = vpow2.f32 %v218_v50  ;;  %v232_v1 = vmul.f32 1.442695, %v217_v18 }
 0x155   :  { %534 = vpow2.f32 %v220_v51  ;;  %v230_v2 = vmul.f32 1.442695, %v216_v57 }
 0x156   :  { %536 = vpow2.f32 %v222_v59 }
 0x157   :  { %538 = vpow2.f32 %v224_v61 }
 0x158   :  { %540 = vpow2.f32 %v226_v53 }
 0x159   :  { %542 = vpow2.f32 %v228_v10 }
 0x15a   :  { %544 = vpow2.f32 %v230_v2 }
 0x15b   :  { %546 = vpow2.f32 %v232_v1 }
 0x15e   :  { %v533_v63 = vpop.eup %532 }
 0x15f   :  { %v535_v0 = vpop.eup %534  ;;  %243 = vperm.xlu1 %530, %v533_v63  }
 0x160   :  { %246 = vperm.xlu0 %531, %v535_v0   ;;  %v537_v17 = vpop.eup %536 }
 0x161   :  { %v539_v19 = vpop.eup %538 }
 0x162   :  { %v541_v8 = vpop.eup %540 }
 0x163   :  { %249 = vperm.xlu1 %530, %v537_v17   ;;  %v543_v20 = vpop.eup %542 }
 0x164   :  { %v545_v23 = vpop.eup %544 }
 0x165   :  { %v547_v24 = vpop.eup %546 }
 0x167   :  { %252 = vperm.xlu1 %530, %v539_v19  }
 0x16b   :  { %255 = vperm.xlu1 %530, %v541_v8  }
 0x16f   :  { %258 = vperm.xlu1 %530, %v543_v20  }
 0x173   :  { %261 = vperm.xlu1 %530, %v545_v23  }
 0x177   :  { %264 = vperm.xlu1 %530, %v547_v24  }
 0x1de   :  { %v244_v26 = vpop.permute.xlu1 %243 }
 0x1df   :  { %v247_v32 = vpop.permute.xlu0 %246  ;;  %v269_v34 = vrot.slane %v244_v26, %v640_v5  ;;  %v317_v59 = vmul.f32 %v244_v26, %v642_v6  ;;  %v318_v4 = vmul.f32 %v244_v26, %v644_v7 }
 0x1e0   :  { %v273_v33 = vrot.slane %v247_v32, %v640_v5  ;;  %v319_v3 = vmul.f32 %v247_v32, %v657_v13  ;;  %v320_v60 = vmul.f32 %v247_v32, %v659_v14 }
 0x1e1   :  { %v333_v61 = vrot.slane %v317_v59, 4  ;;  %v339_v14 = vrot.slane %v318_v4, 4 }
 0x1e2   :  { %v250_v29 = vpop.permute.xlu1 %249  ;;  %v298_v43 = vsel %vm150_vm0, %v273_v33, %v269_v34  ;;  %v345_v13 = vrot.slane %v319_v3, 4  ;;  %v351_v0 = vrot.slane %v320_v60, 4 }
 0x1e3   :  { %v277_v36 = vrot.slane %v250_v29, %v640_v5  ;;  %v322_v62 = vmul.f32 %v250_v29, %v655_v12  ;;  %v334_v7 = vadd.f32 %v333_v61, %v317_v59  ;;  %v340_v1 = vadd.f32 %v339_v14, %v318_v4 }
 0x1e4   :  { %v346_v2 = vadd.f32 %v345_v13, %v319_v3  ;;  %v352_v19 = vadd.f32 %v351_v0, %v320_v60 }
 0x1e5   :  { %v299_v46 = vsel %vm152_vm1, %v277_v36, %v298_v43  ;;  %v335_v20 = vrot.slane %v334_v7, 2  ;;  %v341_v34 = vrot.slane %v340_v1, 2 }
 0x1e6   :  { %v253_v30 = vpop.permute.xlu1 %252  ;;  %v347_v32 = vrot.slane %v346_v2, 2  ;;  %v353_v33 = vrot.slane %v352_v19, 2 }
 0x1e7   :  { %v281_v41 = vrot.slane %v253_v30, %v640_v5  ;;  %v323_v52 = vmul.f32 %v253_v30, %v661_v15  ;;  %v324_v56 = vmul.f32 %v253_v30, %v663_v16  ;;  %v363_v15 = vrot.slane %v322_v62, 4 }
 0x1e9   :  { %v300_v48 = vsel %vm154_vm2, %v281_v41, %v299_v46  ;;  %v369_v10 = vrot.slane %v323_v52, 4  ;;  %v375_v16 = vrot.slane %v324_v56, 4  ;;  %v364_v24 = vadd.f32 %v363_v15, %v322_v62 }
 0x1ea   :  { %v256_v31 = vpop.permute.xlu1 %255 }
 0x1eb   :  { %v285_v42 = vrot.slane %v256_v31, %v640_v5  ;;  %v325_v53 = vmul.f32 %v256_v31, %v669_v21  ;;  %v326_v63 = vmul.f32 %v256_v31, %v671_v22  ;;  %v376_v26 = vadd.f32 %v375_v16, %v324_v56 }
 0x1ec   :  { %v365_v43 = vrot.slane %v364_v24, 2 }
 0x1ed   :  { %v301_v50 = vsel %vm156_vm3, %v285_v42, %v300_v48  ;;  %v381_v17 = vrot.slane %v325_v53, 4  ;;  %v387_v22 = vrot.slane %v326_v63, 4 }
 0x1ee   :  { %v259_v25 = vpop.permute.xlu1 %258 }
 0x1ef   :  { %v289_v44 = vrot.slane %v259_v25, %v640_v5  ;;  %v327_v6 = vmul.f32 %v259_v25, %v677_v27  ;;  %v382_v30 = vadd.f32 %v381_v17, %v325_v53  ;;  %v388_v31 = vadd.f32 %v387_v22, %v326_v63 }
 0x1f1   :  { %v302_v51 = vsel %vm158_vm4, %v289_v44, %v301_v50  ;;  %v393_v18 = vrot.slane %v327_v6, 4  ;;  %v389_v48 = vrot.slane %v388_v31, 2 }
 0x1f2   :  { %v262_v35 = vpop.permute.xlu1 %261 }
 0x1f3   :  { %v293_v47 = vrot.slane %v262_v35, %v640_v5  ;;  %v329_v57 = vmul.f32 %v262_v35, %v685_v37  ;;  %v330_v12 = vmul.f32 %v262_v35, %v687_v38  ;;  %v370_v38 = vadd.f32 %v369_v10, %v323_v52 }
 0x1f4   :  { %v336_v35 = vadd.f32 %v335_v20, %v334_v7  ;;  %v390_v53 = vadd.f32 %v389_v48, %v388_v31 }
 0x1f5   :  { %v303_v54 = vsel %vm160_vm5, %v293_v47, %v302_v51  ;;  %v405_v23 = vrot.slane %v329_v57, 4  ;;  %v411_v37 = vrot.slane %v330_v12, 4  ;;  %v371_v44 = vrot.slane %v370_v38, 2 }
 0x1f6   :  { %v265_v45 = vpop.permute.xlu1 %264  ;;  %v383_v47 = vrot.slane %v382_v30, 2  ;;  %v348_v51 = vadd.f32 %v347_v32, %v346_v2  ;;  %v337_v14 = vrot.slane %v336_v35, 1  ;;  %v391_v22 = vrot.slane %v390_v53, 1 }
 0x1f7   :  { %v297_v49 = vrot.slane %v265_v45, %v640_v5  ;;  %v321_v5 = vmul.f32 %v250_v29, %v653_v11  ;;  %v328_v11 = vmul.f32 %v259_v25, %v679_v28  ;;  %v331_v21 = vmul.f32 %v265_v45, %v689_v39 }
 0x1f8   :  { %v332_v27 = vmul.f32 %v265_v45, %v691_v40  ;;  %v394_v39 = vadd.f32 %v393_v18, %v327_v6  ;;  %v406_v41 = vadd.f32 %v405_v23, %v329_v57  ;;  %v412_v42 = vadd.f32 %v411_v37, %v330_v12 }
 0x1f9   :  { %v304_v55 = vsel %vm162_vm6, %v297_v49, %v303_v54  ;;  %v357_v9 = vrot.slane %v321_v5, 4  ;;  %v399_v28 = vrot.slane %v328_v11, 4  ;;  %v417_v29 = vrot.slane %v331_v21, 4 }
 0x1fa   :  { %v306_v58 = vsel %vm165_vm7, %v304_v55, 0.0  ;;  %v423_v25 = vrot.slane %v332_v27, 4  ;;  %v377_v45 = vrot.slane %v376_v26, 2  ;;  %v395_v49 = vrot.slane %v394_v39, 2 }
 0x1fb   :  { %307 = vadd.xlane.f32.xlu1 %v306_v58  ;;  %v358_v8 = vadd.f32 %v357_v9, %v321_v5  ;;  %v400_v36 = vadd.f32 %v399_v28, %v328_v11  ;;  %v418_v46 = vadd.f32 %v417_v29, %v331_v21  ;;  %v354_v54 = vadd.f32 %v353_v33, %v352_v19 }
 0x1fc   :  { %v424_v50 = vadd.f32 %v423_v25, %v332_v27  ;;  %v342_v55 = vadd.f32 %v341_v34, %v340_v1  ;;  %v407_v60 = vrot.slane %v406_v41, 2  ;;  %v413_v4 = vrot.slane %v412_v42, 2 }
 0x1fd   :  { %v359_v40 = vrot.slane %v358_v8, 2  ;;  %v401_v3 = vrot.slane %v400_v36, 2  ;;  %v366_v5 = vadd.f32 %v365_v43, %v364_v24  ;;  %v372_v61 = vadd.f32 %v371_v44, %v370_v38 }
 0x1fe   :  { %v378_v62 = vadd.f32 %v377_v45, %v376_v26  ;;  %v419_v52 = vrot.slane %v418_v46, 2  ;;  %v384_v56 = vadd.f32 %v383_v47, %v382_v30  ;;  %v396_v63 = vadd.f32 %v395_v49, %v394_v39 }
 0x1ff   :  { %v360_v58 = vadd.f32 %v359_v40, %v358_v8  ;;  %v425_v6 = vrot.slane %v424_v50, 2  ;;  %v349_v13 = vrot.slane %v348_v51, 1  ;;  %v355_v0 = vrot.slane %v354_v54, 1 }
 0x200   :  { %v343_v9 = vrot.slane %v342_v55, 1  ;;  %v402_v11 = vadd.f32 %v401_v3, %v400_v36  ;;  %v408_v57 = vadd.f32 %v407_v60, %v406_v41  ;;  %v414_v12 = vadd.f32 %v413_v4, %v412_v42 }
 0x201   :  { %v361_v7 = vrot.slane %v360_v58, 1  ;;  %v367_v15 = vrot.slane %v366_v5, 1  ;;  %v373_v10 = vrot.slane %v372_v61, 1  ;;  %v379_v16 = vrot.slane %v378_v62, 1 }
 0x202   :  { %v420_v21 = vadd.f32 %v419_v52, %v418_v46  ;;  %v385_v17 = vrot.slane %v384_v56, 1  ;;  %v397_v18 = vrot.slane %v396_v63, 1  ;;  %v426_v27 = vadd.f32 %v425_v6, %v424_v50 }
 0x203   :  { %v350_v2 = vadd.f32 %v349_v13, %v348_v51  ;;  %v356_v19 = vadd.f32 %v355_v0, %v354_v54  ;;  %v338_v1 = vadd.f32 %v337_v14, %v336_v35  ;;  %v344_v8 = vadd.f32 %v343_v9, %v342_v55 }
 0x204   :  { %v362_v20 = vadd.f32 %v361_v7, %v360_v58  ;;  %v403_v28 = vrot.slane %v402_v11, 1  ;;  %v409_v23 = vrot.slane %v408_v57, 1  ;;  %v415_v37 = vrot.slane %v414_v12, 1 }
 0x205   :  { %v368_v24 = vadd.f32 %v367_v15, %v366_v5  ;;  %v374_v38 = vadd.f32 %v373_v10, %v372_v61  ;;  %v380_v26 = vadd.f32 %v379_v16, %v378_v62  ;;  %v421_v29 = vrot.slane %v420_v21, 1 }
 0x206   :  { %v386_v31 = vadd.f32 %v385_v17, %v384_v56  ;;  %v392_v39 = vadd.f32 %v391_v22, %v390_v53  ;;  %v398_v25 = vadd.f32 %v397_v18, %v396_v63  ;;  %v427_v32 = vrot.slane %v426_v27, 1 }
 0x207   :  { %v404_v41 = vadd.f32 %v403_v28, %v402_v11  ;;  %v410_v35 = vadd.f32 %v409_v23, %v408_v57  ;;  %v416_v42 = vadd.f32 %v415_v37, %v414_v12  ;;  %v422_v44 = vadd.f32 %v421_v29, %v420_v21 }
 0x208   :  { %v428_v48 = vadd.f32 %v427_v32, %v426_v27 }
 0x288   :  { %v308_v59 = vpop.xlane.xlu1 %307 }
 0x289   :  { %548 = vrcp.f32 %v308_v59 }
 0x293   :  { %v549_v30 = vpop.eup %548 }
 0x294   :  { %v431_v33 = vrot.slane %v549_v30, 1  ;;  %v432_v34 = vrot.slane %v549_v30, 2  ;;  %v433_v40 = vrot.slane %v549_v30, 3  ;;  %v434_v36 = vrot.slane %v549_v30, 4 }
 0x295   :  { %v435_v43 = vrot.slane %v549_v30, 5  ;;  %v436_v45 = vrot.slane %v549_v30, 6  ;;  %v437_v49 = vrot.slane %v549_v30, 7  ;;  %v446_v54 = vmul.f32 %v549_v30, %v338_v1 }
 0x296   :  { %v448_v46 = vmul.f32 %v431_v33, %v350_v2  ;;  %v450_v47 = vmul.f32 %v432_v34, %v362_v20  ;;  %v449_v50 = vmul.f32 %v431_v33, %v356_v19  ;;  %v452_v51 = vmul.f32 %v433_v40, %v374_v38 }
 0x297   :  { %v447_v55 = vmul.f32 %v549_v30, %v344_v8  ;;  %v451_v58 = vmul.f32 %v432_v34, %v368_v24  ;;  %v454_v59 = vmul.f32 %v434_v36, %v386_v31  ;;  %v453_v3 = vmul.f32 %v433_v40, %v380_v26 }
 0x298   :  { %v455_v60 = vmul.f32 %v434_v36, %v392_v39  ;;  %v456_v4 = vmul.f32 %v435_v43, %v398_v25  ;;  %v478_v5 = vrot.slane %v448_v46, 7  ;;  %v457_v61 = vmul.f32 %v435_v43, %v404_v41 }
 0x299   :  { %v458_v62 = vmul.f32 %v436_v45, %v410_v35  ;;  %v459_v52 = vmul.f32 %v436_v45, %v416_v42  ;;  %v480_v56 = vrot.slane %v450_v47, 6  ;;  %v460_v53 = vmul.f32 %v437_v49, %v422_v44 }
 0x29a   :  { %v479_v63 = vsel %vm150_vm0, %v478_v5, %v446_v54  ;;  %v482_v6 = vrot.slane %v452_v51, 5  ;;  %v492_v13 = vrot.slane %v449_v50, 7  ;;  %v461_v0 = vmul.f32 %v437_v49, %v428_v48 }
 0x29b   :  { %v481_v14 = vsel %vm152_vm1, %v480_v56, %v479_v63  ;;  %v484_v9 = vrot.slane %v454_v59, 4  ;;  %v494_v7 = vrot.slane %v451_v58, 6  ;;  %v486_v57 = vrot.slane %v456_v4, 3 }
 0x29c   :  { %v483_v11 = vsel %vm154_vm2, %v482_v6, %v481_v14  ;;  %v493_v12 = vsel %vm150_vm0, %v492_v13, %v447_v55  ;;  %v496_v15 = vrot.slane %v453_v3, 5  ;;  %v488_v16 = vrot.slane %v458_v62, 2 }
 0x29d   :  { %v485_v10 = vsel %vm156_vm3, %v484_v9, %v483_v11  ;;  %v495_v21 = vsel %vm152_vm1, %v494_v7, %v493_v12  ;;  %v498_v17 = vrot.slane %v455_v60, 4  ;;  %v490_v18 = vrot.slane %v460_v53, 1 }
 0x29e   :  { %v487_v22 = vsel %vm158_vm4, %v486_v57, %v485_v10  ;;  %v497_v27 = vsel %vm154_vm2, %v496_v15, %v495_v21  ;;  %v500_v2 = vrot.slane %v457_v61, 3  ;;  %v502_v8 = vrot.slane %v459_v52, 2 }
 0x29f   :  { %v489_v19 = vsel %vm160_vm5, %v488_v16, %v487_v22  ;;  %v499_v1 = vsel %vm156_vm3, %v498_v17, %v497_v27  ;;  %v504_v23 = vrot.slane %v461_v0, 1 }
 0x2a0   :  { %v491_v20 = vsel %vm162_vm6, %v490_v18, %v489_v19  ;;  %v501_v28 = vsel %vm158_vm4, %v500_v2, %v499_v1 }
 0x2a1   :  { %v503_v37 = vsel %vm160_vm5, %v502_v8, %v501_v28  ;;  %508 = vst [vmem:[#allocation6] sm:$0xff] %v491_v20 }
 0x2a2   :  { %v505_v24 = vsel %vm162_vm6, %v504_v23, %v503_v37 }
 0x2a3   :  { %509 = vst [vmem:[#allocation6 + $0x8] sm:$0xff] %v505_v24 }
 0x2a4   :  { %583 = shalt.err (!%p580_p12)
}
 0x2a5   :  { %s584_s5 = scalar_lea.hbm %s787_s3, 256 }
 0x2a6   :  { %p585_p13 = scmp.ne.s32.totalorder %s787_s3, %s584_s5  ;;  %p588_p0 = scmp.lt.u32.totalorder %s584_s5, %s787_s3 }
 0x2a8   :  { %p590_p1 = pnand %p588_p0, %p585_p13 }
 0x2aa   :  { %593 = shalt.err (!%p590_p1)
}
 0x2ab   :  { %519 = dma.vmem_to_hbm [thread:$0]  %s517_s28, 256, %s787_s3, [#allocation5]  }
 0x2ac   :  { %596 = dma.done.wait [#allocation5], 256  }
 0x2ad   :  { %597 = vsyncadd [#allocation5], 4294967040 }
 0x2ae   :  { %523 = vsyncpa [#allocation4], 1 }
 0x2af   :  { %524 = vsyncpa [#allocation5], 1 }

</bundles_post_ra>
